<compile_context>
chip_gen: v6e
topology: v6e:2x2x1
jax: 0.10.0
libtpu: 0.0.40
codegen_flags: <defaults>
</compile_context>

<pallas_src>
import jax
import jax.numpy as jnp
from jax import lax
from jax.experimental import pallas as pl
from jax.experimental.pallas import tpu as pltpu


def _atten_kernel(x_ref, w1_ref, w2_ref, af_ref, out_ref):
    site = out_ref.shape[1]

    # All sites' Linear(F->H)+bias (+ReLU) as ONE MXU matmul against the
    # augmented block-diagonal W1 (bias row consumed by the ones column in x).
    trans = jnp.dot(x_ref[...], w1_ref[...],
                    preferred_element_type=jnp.float32)          # (B, site*H) f32
    trans = jnp.maximum(trans, 0.0)

    # All sites' Linear(H->1) as ONE MXU pass against lane-dense W2 (site, site*H),
    # contracting on the 256-wide axis (keeps both operands lane-dense).
    val = lax.dot_general(trans.astype(w2_ref.dtype), w2_ref[...],
                          dimension_numbers=(((1,), (1,)), ((), ())),
                          preferred_element_type=jnp.float32)    # (B, site) f32

    # Epilogue: val * area + (flowbase + b2*area); area / fb' packed in af.
    out_ref[...] = val * af_ref[:, :site] + af_ref[:, site:]


def pack_params(w1, b1, w2, b2, dtype=jnp.float32):
    """One-time (parameter-load-time) packing of per-site weights.

    w1: (site, H, F)   b1: (site, H)   w2: (site, H)   b2: (site,)
    Returns:
      w1_aug: (F*site + 1, site*H)  block-diagonal W1 with rows ordered
              (f*site + s) plus a trailing bias row (bias trick).
      w2ld  : (site, site*H)        lane-dense W2 (row s holds w2[s] in block s).
      b2    : unchanged (folded into flowbase per-call).
    """
    site, H, F = w1.shape
    eye = jnp.eye(site, dtype=w1.dtype)
    # w1bd[f*site + s, t*H + h] = w1[s, h, f] if s == t else 0
    w1t = jnp.transpose(w1, (2, 0, 1))                               # (F, site, H)
    w1bd = (w1t[:, :, None, :] * eye[None, :, :, None]).reshape(F * site, site * H)
    w1_aug = jnp.concatenate([w1bd, b1.reshape(1, site * H)], axis=0)
    # w2ld[s, t*H + h] = w2[s, h] if s == t else 0
    w2ld = (w2[:, None, :] * eye[:, :, None]).reshape(site, site * H)
    return w1_aug.astype(dtype), w2ld.astype(dtype), b2


def atten_model(x, flowbase, area, w1_aug, w2ld, b2):
    """Forward pass.  x: (B, F, site), flowbase/area: (B, site) -> (B, site)."""
    B, F, site = x.shape
    siteH = w2ld.shape[1]
    K = w1_aug.shape[0]                                              # F*site + 1
    wdtype = w1_aug.dtype

    # Zero-copy reshape (W1 rows are pre-ordered (f*site+s)); append the ones
    # column for the b1 bias trick.
    x2d = x.reshape(B, F * site).astype(wdtype)
    x_aug = jnp.concatenate([x2d, jnp.ones((B, 1), wdtype)], axis=1)  # (B, K)

    # Fold b2 into flowbase and merge area/flowbase into ONE small operand.
    af = jnp.concatenate([area, flowbase + area * b2[None, :]], axis=1)  # (B, 2*site) f32
    af = af.astype(jnp.float32)

    itemsize = jnp.dtype(wdtype).itemsize
    cost = pl.CostEstimate(
        flops=2 * B * K * siteH + 2 * B * siteH * site + 3 * B * site,
        transcendentals=0,
        bytes_accessed=(B * K * itemsize + K * siteH * itemsize
                        + site * siteH * itemsize + B * 2 * site * 4
                        + B * site * 4),
    )

    vmem = pl.BlockSpec(memory_space=pltpu.MemorySpace.VMEM)
    return pl.pallas_call(
        _atten_kernel,
        out_shape=jax.ShapeDtypeStruct((B, site), jnp.float32),
        in_specs=[vmem] * 4,
        out_specs=vmem,
        cost_estimate=cost,
    )(x_aug, w1_aug, w2ld, af)


def atten_model_ref(x, w1, b1, w2, b2, area, flowbase):
    """Plain-JAX reference mirroring the PyTorch per-site loop."""
    B, F, site = x.shape
    cols = []
    for i in range(site):
        trans = jnp.maximum(x[:, :, i] @ w1[i].T + b1[i], 0.0)       # (B, H)
        cols.append(trans @ w2[i] + b2[i])                           # (B,)
    out = jnp.stack(cols, axis=1)                                    # (B, site)
    return out * area + flowbase


if __name__ == "__main__":
    # config: batch_size=2, site=8, per-site input features F=4, hidden H=32
    B, SITE, F, H = 2, 8, 4, 32

    key = jax.random.PRNGKey(0)
    ks = jax.random.split(key, 7)

    x = jax.random.normal(ks[0], (B, F, SITE), dtype=jnp.float32)    # PyTorch layout
    w1 = jax.random.normal(ks[1], (SITE, H, F), dtype=jnp.float32) * 0.1
    b1 = jax.random.normal(ks[2], (SITE, H), dtype=jnp.float32) * 0.1
    w2 = jax.random.normal(ks[3], (SITE, H), dtype=jnp.float32) * 0.1
    b2 = jax.random.normal(ks[4], (SITE,), dtype=jnp.float32) * 0.1

    area = jax.random.normal(ks[5], (B, SITE), dtype=jnp.float32)
    flowbase = jax.random.normal(ks[6], (B, SITE), dtype=jnp.float32)

    # One-time packing (parameter-load time), kept OUT of the per-call path.
    w1_aug, w2ld, b2p = pack_params(w1, b1, w2, b2)                  # f32 (exactness)
    w1_aug, w2ld = jax.block_until_ready((w1_aug, w2ld))

    fwd = jax.jit(atten_model)
    out = jax.block_until_ready(fwd(x, flowbase, area, w1_aug, w2ld, b2p))

    ref = atten_model_ref(x, w1, b1, w2, b2, area, flowbase)
    assert out.shape == (B, SITE)
    assert jnp.allclose(out, ref, atol=1e-5, rtol=1e-5), (out, ref)

    print("KERNEL_OK")
</pallas_src>

<mosaic_0001>
module attributes {stable_mosaic.version = 11 : i64} {
  func.func @_atten_kernel(%arg0: memref<2x33xf32, #tpu.memory_space<vmem>>, %arg1: memref<33x256xf32, #tpu.memory_space<vmem>>, %arg2: memref<8x256xf32, #tpu.memory_space<vmem>>, %arg3: memref<2x16xf32, #tpu.memory_space<vmem>>, %arg4: memref<2x8xf32, #tpu.memory_space<vmem>>) attributes {dimension_semantics = [], scalar_prefetch = 0 : i64, scratch_operands = 0 : i64, tpu.core_type = #tpu.core_type<tc>} {
    %c0 = arith.constant 0 : index
    %c0_0 = arith.constant 0 : index
    %0 = vector.load %arg0[%c0, %c0_0] : memref<2x33xf32, #tpu.memory_space<vmem>>, vector<2x33xf32>
    %c0_1 = arith.constant 0 : index
    %c0_2 = arith.constant 0 : index
    %1 = vector.load %arg1[%c0_1, %c0_2] : memref<33x256xf32, #tpu.memory_space<vmem>>, vector<33x256xf32>
    %cst = arith.constant dense<0.000000e+00> : vector<2x256xf32>
    %2 = tpu.matmul %0, %1, %cst {dimension_numbers = #tpu.dot_dimension_numbers<[1], [0], [0], [1], [0, 0, 1, 1], [], []>} : vector<2x33xf32>, vector<33x256xf32>, vector<2x256xf32> -> vector<2x256xf32>
    %cst_3 = arith.constant 0.000000e+00 : f32
    %3 = vector.broadcast %cst_3 : f32 to vector<2x256xf32>
    %4 = arith.maximumf %2, %3 : vector<2x256xf32>
    %c0_4 = arith.constant 0 : index
    %c0_5 = arith.constant 0 : index
    %5 = vector.load %arg2[%c0_4, %c0_5] : memref<8x256xf32, #tpu.memory_space<vmem>>, vector<8x256xf32>
    %cst_6 = arith.constant dense<0.000000e+00> : vector<2x8xf32>
    %6 = tpu.matmul %4, %5, %cst_6 {dimension_numbers = #tpu.dot_dimension_numbers<[1], [1], [0], [0], [0, 0, 1, 0], [], []>} : vector<2x256xf32>, vector<8x256xf32>, vector<2x8xf32> -> vector<2x8xf32>
    %c0_7 = arith.constant 0 : index
    %c0_8 = arith.constant 0 : index
    %7 = vector.load %arg3[%c0_7, %c0_8] : memref<2x16xf32, #tpu.memory_space<vmem>>, vector<2x8xf32>
    %8 = arith.mulf %6, %7 : vector<2x8xf32>
    %c0_9 = arith.constant 0 : index
    %c8 = arith.constant 8 : index
    %9 = vector.load %arg3[%c0_9, %c8] : memref<2x16xf32, #tpu.memory_space<vmem>>, vector<2x8xf32>
    %10 = arith.addf %8, %9 : vector<2x8xf32>
    %c0_10 = arith.constant 0 : index
    %c0_11 = arith.constant 0 : index
    %11 = vector.load %arg4[%c0_10, %c0_11] : memref<2x8xf32, #tpu.memory_space<vmem>>, vector<2x8xf32>
    tpu.vector_store %arg4[%c0_10, %c0_11], %10 {strides = array<i32>} : memref<2x8xf32, #tpu.memory_space<vmem>>, vector<2x8xf32>,
    return
  }
}

</mosaic_0001>

<bundles_post_ra>
// kernel: atten_model.1
= control target key start
LH: loop header
LB: loop body
LE: loop exit
PB: predicated region body
PF: predicated region fallthrough
CT: control target
= control target key end

     0   :  { %9 = vsyncpa [#allocation3], 0  ;;  %s325_s0 = inlined_call_operand.vmem [shape: f32[2,33], index: 0, kind: input, shape index: {}]   ;;  %s326_s1 = inlined_call_operand.hbm [shape: f32[33,256], index: 1, kind: input, shape index: {}]   ;;  %s327_s2 = inlined_call_operand.vmem [shape: f32[8,256], index: 2, kind: input, shape index: {}]   ;;  %s328_s3 = inlined_call_operand.vmem [shape: f32[2,16], index: 3, kind: input, shape index: {}]   ;;  %s329_s4 = inlined_call_operand.hbm [shape: f32[2,8], index: 4, kind: output, shape index: {}]  }
   0x1   :  { %10 = vsyncpa [#allocation4], 0  ;;  %s276_s15 = smov [#allocation2]  }
   0x2   :  { %s18_s16 = sshll.u32 %s276_s15, 4  ;;  %s19_s16 = int_to_ptr.vmem [resolvable:$true] %s18_s16 }
   0x3   :  { %s240_s17 = scalar_lea.vmem %s19_s16, 1280  ;;  %p245_p1 = scmp.lt.s32.totalorder %s19_s16, %s19_s16 }
   0x4   :  { %p241_p0 = scmp.ne.s32.totalorder %s19_s16, %s240_s17  ;;  %p246_p2 = scmp.lt.s32.totalorder %s240_s17, %s240_s17 }
   0x6   :  { %p247_p3 = por %p246_p2, %p245_p1 }
   0x8   :  { %p248_p4 = pnand %p247_p3, %p241_p0 }
   0xa   :  { %251 = shalt.err (!%p248_p4)
}
   0xb   :  { %s277_s18 = smov 256   ;;  %s278_s19 = smov 16  }
   0xc   :  { %24 = dma.hbm_to_vmem [thread:$0]  %s326_s1, 1280, %s19_s16, [#allocation3], %s277_s18, %s277_s18, %s278_s19  }
   0xd   :  { %272 = dma.done.wait [#allocation3], 1280  }
   0xe   :  { %273 = vsyncadd [#allocation3], 4294966016  ;;  %v279_v0 = vmov 0.0   ;;  %vm47_vm0 = vcmask 1040384   ;;  %v42_v1 = vld [vmem:[#allocation2 + $0x48] sm:$0x1] }
   0xf   :  { %118 = vmatprep.mubr.f32.mxu0 %v279_v0  ;;  %v41_v2 = vld [vmem:[#allocation2 + $0x40] sm:$0x1]  ;;  %v40_v3 = vld [vmem:[#allocation2 + $0x38] sm:$0xff]  ;;  %223 = vmatprep.subr.msk.mxu0 %vm47_vm0, %v42_v1  ;;  %v39_v4 = vld [vmem:[#allocation2 + $0x30] sm:$0xff]  ;;  %vm43_vm1 = vcmask 269312   ;;  %s280_s29 = smov 120  }
  0x10   :  { %224 = vmatpush1.msk.msra.mxu0 %vm47_vm0, %v41_v2  ;;  %v38_v5 = vld [vmem:[#allocation2 + $0x28] sm:$0xff]  ;;  %v37_v6 = vld [vmem:[#allocation2 + $0x20] sm:$0xff]  ;;  %v36_v7 = vld [vmem:[#allocation2 + $0x18] sm:$0xff]  ;;  %vm206_vm2 = vcmask 58368  }
  0x11   :  { %78 = vmatprep.subr.mxu0 %v40_v3  ;;  %v35_v8 = vld [vmem:[#allocation2 + $0x10] sm:$0xff]  ;;  %v34_v9 = vld [vmem:[#allocation2 + $0x8] sm:$0xff]  ;;  %v33_v10 = vld [vmem:[#allocation2] sm:$0xff] }
  0x12   :  { %79 = vmatpush1.msra.mxu0 %v39_v4  ;;  %v32_v11 = vld [vmem:[%s325_s0] sm:$0x3]  ;;  %v128_v12 = vld [vmem:[%s327_s2 + $0x8] sm:$0xff]  ;;  %s281_s0 = smov [#allocation5]  }
  0x13   :  { %80 = vmatprep.subr.mxu0 %v38_v5  ;;  %159 = vmatprep.subr.mxu1 %v128_v12  ;;  %v127_v13 = vld [vmem:[%s327_s2] sm:$0xff]  ;;  %s214_s30 = sshll.u32 %s281_s0, 4  ;;  %s215_s30 = int_to_ptr.vmem [resolvable:$true] %s214_s30 }
  0x14   :  { %81 = vmatpush1.msra.mxu0 %v37_v6  ;;  %160 = vmatpush1.xpose.msra.mxu1 %v127_v13  ;;  %v199_v14 = vld [vmem:[%s328_s3] sm:$0x3]  ;;  %s252_s2 = scalar_lea.vmem %s215_s30, 32  ;;  %p257_p6 = scmp.lt.s32.totalorder %s215_s30, %s215_s30 }
  0x15   :  { %82 = vmatprep.subr.mxu0 %v36_v7  ;;  %202 = vrot.lane.b32.xlu0 %v199_v14, %s280_s29  ;;  %p253_p5 = scmp.ne.s32.totalorder %s215_s30, %s252_s2  ;;  %p258_p7 = scmp.lt.s32.totalorder %s252_s2, %s252_s2 }
  0x16   :  { %83 = vmatpush1.msra.mxu0 %v35_v8 }
  0x17   :  { %84 = vmatprep.subr.mxu0 %v34_v9  ;;  %p259_p8 = por %p258_p7, %p257_p6 }
  0x18   :  { %85 = vmatpush1.msra.mxu0 %v33_v10 }
  0x19   :  { %225 = vmatmul.mubr.msk.f32.vlgmr.msra.gmra.mxu0 %vm43_vm1, %v32_v11  ;;  %p260_p9 = pnand %p259_p8, %p253_p5 }
  0x87   :  { %v203_v20 = vpop.permute.xlu0 %202 }
  0xd9   :  { %v120_v15 = vpop.f32.mrf.mxu0 }
  0xda   :  { %v125_v18 = vmax.f32 %v120_v15, 0.0 }
  0xdb   :  { %v122_v16 = vpop.f32.mrf.mxu0 }
  0xdc   :  { %v126_v17 = vmax.f32 %v122_v16, 0.0 }
  0xde   :  { %193 = vmatprep.mubr.f32.mxu1 %v126_v17 }
  0xdf   :  { %194 = vmatmul.mubr.f32.vlgmr.msra.gmra.mxu1 %v125_v18 }
 0x19f   :  { %v195_v19 = vpop.f32.mrf.mxu1 }
 0x1a0   :  { %v200_v21 = vmul.f32 %v199_v14, %v195_v19 }
 0x1a1   :  { %v197_v22 = vpop.f32.mrf.mxu1 }
 0x1a2   :  { %v205_v23 = vadd.f32 %v203_v20, %v200_v21 }
 0x1a4   :  { %207 = vst.msk [vmem:[#allocation5] sm:$0x3] %vm206_vm2, %v205_v23 }
 0x1a5   :  { %263 = shalt.err (!%p260_p9)
}
 0x1a6   :  { %217 = dma.vmem_to_hbm [thread:$0]  %s215_s30, 32, %s329_s4, [#allocation4]  }
 0x1a7   :  { %274 = dma.done.wait [#allocation4], 32  }
 0x1a8   :  { %275 = vsyncadd [#allocation4], 4294967264 }
 0x1a9   :  { %221 = vsyncpa [#allocation3], 1 }
 0x1aa   :  { %222 = vsyncpa [#allocation4], 1 }

</bundles_post_ra>
